<compile_context>
chip_gen: v7x
topology: tpu7x:2x2x1
jax: 0.10.0
libtpu: 0.0.40
codegen_flags: <defaults>
</compile_context>

<pallas_src>
import math
import functools

import jax
import jax.numpy as jnp
from jax import lax
from jax.experimental import pallas as pl
from jax.experimental.pallas import tpu as pltpu

_EPS = 1e-12  # F.normalize eps


def _round_up(v, m):
    return ((v + m - 1) // m) * m


def _mmp_kernel(xn_ref, wn_ref, label_ref, o_ref, *,
                tn, s, cos_m1, sin_m1, th, mm, m2, easy_margin):
    j = pl.program_id(0)  # out-feature (N) tile index -- outer grid axis

    xn = xn_ref[...]      # (TB, D)  pre-normalized, mxu_dtype
    wn = wn_ref[...]      # (TN, D)  pre-normalized, mxu_dtype

    # cosine = xn @ wn.T without materializing a transpose: contract on D.
    cosine = lax.dot_general(
        xn, wn,
        dimension_numbers=(((1,), (1,)), ((), ())),
        preferred_element_type=jnp.float32)              # (TB, TN) f32

    # one-hot of label within this N tile (scatter_ equivalent).
    col = j * tn + lax.broadcasted_iota(jnp.int32, cosine.shape, 1)
    one_hot = col == label_ref[...]                      # label_ref: (TB, 1) int32

    # Margin math only for the labeled column: a (TB, 1) vector.
    # If the label falls outside this tile the masked reduce yields 0 and the final
    # where never selects phi, so this is safe.
    cos_l = jnp.sum(jnp.where(one_hot, cosine, 0.0), axis=-1, keepdims=True)
    sin_l = jnp.sqrt(jnp.clip(1.0 - cos_l * cos_l, 0.0, 1.0))
    phi_l = cos_l * cos_m1 - sin_l * sin_m1
    if easy_margin:
        phi_l = jnp.where(cos_l > 0.0, phi_l, cos_l)
    else:
        phi_l = jnp.where(cos_l - th > 0.0, phi_l, cos_l - mm)
    phi_l = phi_l - m2                                    # fold additive margin in

    # output = (one_hot ? (phi - m2) : cosine) * s
    # Full-tile work is just compare + select + scale (VPU), lane-dense store.
    o_ref[...] = (jnp.where(one_hot, phi_l, cosine) * s).astype(o_ref.dtype)


def multi_margin_product(x, weight, label, *, s=32.0, m1=0.2, m2=0.35,
                         easy_margin=False, tn=None, tb=None,
                         mxu_dtype=jnp.bfloat16, out_dtype=jnp.float32):
    B, D = x.shape
    N, D2 = weight.shape
    assert D == D2, "in_feature mismatch"
    eps2 = _EPS * _EPS

    # --- Hoisted normalization of BOTH operands (done once in XLA) -------------------
    # rsqrt(max(||v||^2, eps^2)) == 1 / max(||v||, eps)  (matches F.normalize).
    x32 = x.astype(jnp.float32)
    xn = (x32 * lax.rsqrt(jnp.maximum(jnp.sum(x32 * x32, -1, keepdims=True), eps2))
          ).astype(mxu_dtype)
    w32 = weight.astype(jnp.float32)
    wn = (w32 * lax.rsqrt(jnp.maximum(jnp.sum(w32 * w32, -1, keepdims=True), eps2))
          ).astype(mxu_dtype)

    label2 = label.astype(jnp.int32).reshape(B, 1)

    # --- Batch tiling -----------------------------------------------------------------
    if tb is None:
        tb = B if B <= 256 else 256
    if tb >= B:
        tb = B
        b_pad = B
    else:
        tb = _round_up(tb, 8)
        b_pad = _round_up(B, tb)
    if b_pad != B:
        xn = jnp.pad(xn, ((0, b_pad - B), (0, 0)))
        label2 = jnp.pad(label2, ((0, b_pad - B), (0, 0)))
    b_tiles = b_pad // tb

    # --- N tiling ----------------------------------------------------------------------
    n128 = _round_up(N, 128)
    itemsize = jnp.dtype(mxu_dtype).itemsize
    if tn is None:
        w_tile_budget = 8 * 1024 * 1024            # per weight buffer (double-buffered)
        tn = w_tile_budget // (2 * D * itemsize)
        tn = max(128, min(2048, (tn // 128) * 128))
    tn = max(128, min(_round_up(tn, 128), n128))
    # Keep >= ~8 outer grid steps when there is no batch tiling so that double
    # buffering (and the v7x 2-TC split of the outer axis) still hide the weight DMA.
    if b_tiles == 1 and n128 // 128 >= 8:
        tn = min(tn, max(128, ((n128 // 8) // 128) * 128))
    # Prefer a tn that divides round_up(N, 128): avoids padding wn by up to tn-1 rows.
    nb = n128 // 128
    best_div = 1
    for cand in range(1, tn // 128 + 1):
        if nb % cand == 0:
            best_div = cand
    tn_div = best_div * 128
    if 2 * tn_div >= tn:
        tn = tn_div
        n_pad = n128
    else:
        n_pad = _round_up(N, tn)
    if n_pad != N:
        # Padded rows are exact zeros (normalization already done) -> cosine == 0 there.
        wn = jnp.pad(wn, ((0, n_pad - N), (0, 0)))
    n_tiles = n_pad // tn

    # --- VMEM budget: double-buffered blocks + in-kernel temporaries -------------------
    out_isz = jnp.dtype(out_dtype).itemsize
    est = (2 * (tb * D * itemsize                 # xn block
                + tn * D * itemsize               # wn block
                + tb * tn * out_isz               # output block
                + tb * 128 * 4)                   # label block (lane-padded)
           + 3 * tb * tn * 4)                     # cosine + iota/mask + store staging
    vmem_limit = int(min(max(est + (4 << 20), 32 << 20), 64 << 20))  # <= v7x physical

    kern = functools.partial(
        _mmp_kernel,
        tn=tn, s=float(s),
        cos_m1=float(math.cos(m1)), sin_m1=float(math.sin(m1)),
        th=float(math.cos(math.pi - m1)), mm=float(math.sin(math.pi - m1) * m1),
        m2=float(m2), easy_margin=bool(easy_margin),
    )

    out = pl.pallas_call(
        kern,
        out_shape=jax.ShapeDtypeStruct((b_pad, n_pad), out_dtype),
        # N outer, batch inner: the weight block index is constant across consecutive
        # inner steps, so the weight tile stays resident and is DMA'd from HBM once.
        grid=(n_tiles, b_tiles),
        in_specs=[
            pl.BlockSpec((tb, D), lambda j, i: (i, 0)),   # pre-normalized x tile
            pl.BlockSpec((tn, D), lambda j, i: (j, 0)),   # pre-normalized weight tile
            pl.BlockSpec((tb, 1), lambda j, i: (i, 0)),   # labels for this batch tile
        ],
        out_specs=pl.BlockSpec((tb, tn), lambda j, i: (i, j)),
        compiler_params=pltpu.CompilerParams(
            dimension_semantics=("parallel", "parallel"),
            vmem_limit_bytes=vmem_limit),
    )(xn, wn, label2)

    if b_pad != B or n_pad != N:
        out = out[:B, :N]
    return out


def _reference(x, weight, label, *, s=32.0, m1=0.2, m2=0.35, easy_margin=False):
    eps = 1e-12
    xn = x / jnp.maximum(jnp.linalg.norm(x, axis=1, keepdims=True), eps)
    wn = weight / jnp.maximum(jnp.linalg.norm(weight, axis=1, keepdims=True), eps)
    cosine = xn @ wn.T
    sine = jnp.sqrt(jnp.clip(1.0 - cosine ** 2, 0.0, 1.0))
    phi = cosine * math.cos(m1) - sine * math.sin(m1)
    th = math.cos(math.pi - m1)
    mm = math.sin(math.pi - m1) * m1
    if easy_margin:
        phi = jnp.where(cosine > 0, phi, cosine)
    else:
        phi = jnp.where(cosine - th > 0, phi, cosine - mm)
    one_hot = jax.nn.one_hot(label, weight.shape[0], dtype=cosine.dtype)
    out = one_hot * phi + (1.0 - one_hot) * cosine
    out = out - one_hot * m2
    return out * s


if __name__ == "__main__":
    # Small shapes consistent with the module (in_feature=128, reduced out_feature).
    B, D, N = 8, 128, 2048
    key = jax.random.PRNGKey(0)
    kx, kw, kl = jax.random.split(key, 3)

    x = jax.random.normal(kx, (B, D), dtype=jnp.float32)

    # Deterministic xavier_uniform_-style init for weight (out_feature, in_feature).
    bound = math.sqrt(6.0 / (D + N))
    weight = jax.random.uniform(kw, (N, D), dtype=jnp.float32,
                                minval=-bound, maxval=bound)

    label = jax.random.randint(kl, (B,), 0, N, dtype=jnp.int32)

    ref = _reference(x, weight, label, s=32.0, m1=0.2, m2=0.35, easy_margin=False)

    # 1) f32 MXU path: tight correctness check against the reference.
    out_f32 = multi_margin_product(x, weight, label, s=32.0, m1=0.2, m2=0.35,
                                   easy_margin=False, mxu_dtype=jnp.float32)
    out_f32 = jax.block_until_ready(out_f32)
    assert out_f32.shape == (B, N)
    assert bool(jnp.allclose(out_f32, ref, rtol=2e-3, atol=2e-3)), \
        "f32-path kernel output mismatch vs reference"

    # 2) Default bf16 MXU fast path: looser tolerance (bf16 cosine error ~1e-3, scaled by s).
    out_bf16 = multi_margin_product(x, weight, label, s=32.0, m1=0.2, m2=0.35,
                                    easy_margin=False)
    out_bf16 = jax.block_until_ready(out_bf16)
    assert out_bf16.shape == (B, N)
    assert bool(jnp.allclose(out_bf16, ref, rtol=5e-2, atol=2e-1)), \
        "bf16-path kernel output mismatch vs reference"

    # 3) Odd shapes (exercise batch/out-feature padding + slicing), f32 path.
    B2, N2 = 5, 1000
    x2 = jax.random.normal(kx, (B2, D), dtype=jnp.float32)
    w2 = jax.random.uniform(kw, (N2, D), dtype=jnp.float32, minval=-bound, maxval=bound)
    l2 = jax.random.randint(kl, (B2,), 0, N2, dtype=jnp.int32)
    ref2 = _reference(x2, w2, l2, s=32.0, m1=0.2, m2=0.35, easy_margin=False)
    out2 = multi_margin_product(x2, w2, l2, s=32.0, m1=0.2, m2=0.35,
                                easy_margin=False, mxu_dtype=jnp.float32)
    out2 = jax.block_until_ready(out2)
    assert out2.shape == (B2, N2)
    assert bool(jnp.allclose(out2, ref2, rtol=2e-3, atol=2e-3)), \
        "padded-shape kernel output mismatch vs reference"

    print("KERNEL_OK")
</pallas_src>

<mosaic_0001>
module attributes {stable_mosaic.version = 11 : i64} {
  func.func @_mmp_kernel(%arg0: i32, %arg1: i32, %arg2: memref<8x128xf32, #tpu.memory_space<vmem>>, %arg3: memref<256x128xf32, #tpu.memory_space<vmem>>, %arg4: memref<8x1xi32, #tpu.memory_space<vmem>>, %arg5: memref<8x256xf32, #tpu.memory_space<vmem>>) attributes {dimension_semantics = [#tpu.dimension_semantics<parallel>, #tpu.dimension_semantics<parallel>], iteration_bounds = array<i64: 8, 1>, scalar_prefetch = 0 : i64, scratch_operands = 0 : i64, tpu.core_type = #tpu.core_type<tc>, window_params = [{transform_indices = @transform_0, window_bounds = array<i64: 8, 128>}, {transform_indices = @transform_1, window_bounds = array<i64: 256, 128>}, {transform_indices = @transform_2, window_bounds = array<i64: 8, 1>}, {transform_indices = @transform_3, window_bounds = array<i64: 8, 256>}]} {
    %c0 = arith.constant 0 : index
    %c0_0 = arith.constant 0 : index
    %0 = vector.load %arg2[%c0, %c0_0] : memref<8x128xf32, #tpu.memory_space<vmem>>, vector<8x128xf32>
    %c0_1 = arith.constant 0 : index
    %c0_2 = arith.constant 0 : index
    %1 = vector.load %arg3[%c0_1, %c0_2] : memref<256x128xf32, #tpu.memory_space<vmem>>, vector<256x128xf32>
    %cst = arith.constant dense<0.000000e+00> : vector<8x256xf32>
    %2 = tpu.matmul %0, %1, %cst {dimension_numbers = #tpu.dot_dimension_numbers<[1], [1], [0], [0], [0, 0, 1, 0], [], []>} : vector<8x128xf32>, vector<256x128xf32>, vector<8x256xf32> -> vector<8x256xf32>
    %c256_i32 = arith.constant 256 : i32
    %3 = arith.muli %arg0, %c256_i32 : i32
    %4 = tpu.iota {dimensions = array<i32: 1>} : vector<8x256xi32>
    %5 = vector.broadcast %3 : i32 to vector<8x256xi32>
    %6 = arith.addi %5, %4 : vector<8x256xi32>
    %c0_3 = arith.constant 0 : index
    %c0_4 = arith.constant 0 : index
    %7 = vector.load %arg4[%c0_3, %c0_4] : memref<8x1xi32, #tpu.memory_space<vmem>>, vector<8x1xi32>
    %8 = vector.broadcast %7 : vector<8x1xi32> to vector<8x256xi32>
    %9 = arith.cmpi eq, %6, %8 : vector<8x256xi32>
    %cst_5 = arith.constant 0.000000e+00 : f32
    %10 = vector.broadcast %cst_5 : f32 to vector<8x256xf32>
    %11 = arith.select %9, %2, %10 : vector<8x256xi1>, vector<8x256xf32>
    %cst_6 = arith.constant dense<0.000000e+00> : vector<8xf32>
    %12 = vector.multi_reduction <add>, %11, %cst_6 [1] : vector<8x256xf32> to vector<8xf32>
    %13 = vector.shape_cast %12 : vector<8xf32> to vector<8x1xf32>
    %14 = arith.mulf %13, %13 : vector<8x1xf32>
    %cst_7 = arith.constant 1.000000e+00 : f32
    %15 = vector.broadcast %cst_7 : f32 to vector<8x1xf32>
    %16 = arith.subf %15, %14 : vector<8x1xf32>
    %cst_8 = arith.constant 0.000000e+00 : f32
    %cst_9 = arith.constant 1.000000e+00 : f32
    %17 = vector.broadcast %cst_8 : f32 to vector<8x1xf32>
    %18 = arith.maximumf %17, %16 : vector<8x1xf32>
    %19 = vector.broadcast %cst_9 : f32 to vector<8x1xf32>
    %20 = arith.minimumf %19, %18 : vector<8x1xf32>
    %21 = math.sqrt %20 : vector<8x1xf32>
    %cst_10 = arith.constant 0.980066597 : f32
    %22 = vector.broadcast %cst_10 : f32 to vector<8x1xf32>
    %23 = arith.mulf %13, %22 : vector<8x1xf32>
    %cst_11 = arith.constant 0.198669329 : f32
    %24 = vector.broadcast %cst_11 : f32 to vector<8x1xf32>
    %25 = arith.mulf %21, %24 : vector<8x1xf32>
    %26 = arith.subf %23, %25 : vector<8x1xf32>
    %cst_12 = arith.constant -0.980066597 : f32
    %27 = vector.broadcast %cst_12 : f32 to vector<8x1xf32>
    %28 = arith.subf %13, %27 : vector<8x1xf32>
    %cst_13 = arith.constant 0.000000e+00 : f32
    %29 = vector.broadcast %cst_13 : f32 to vector<8x1xf32>
    %30 = arith.cmpf ogt, %28, %29 : vector<8x1xf32>
    %cst_14 = arith.constant 0.0397338644 : f32
    %31 = vector.broadcast %cst_14 : f32 to vector<8x1xf32>
    %32 = arith.subf %13, %31 : vector<8x1xf32>
    %33 = arith.select %30, %26, %32 : vector<8x1xi1>, vector<8x1xf32>
    %cst_15 = arith.constant 3.500000e-01 : f32
    %34 = vector.broadcast %cst_15 : f32 to vector<8x1xf32>
    %35 = arith.subf %33, %34 : vector<8x1xf32>
    %36 = vector.shape_cast %35 : vector<8x1xf32> to vector<8x1xf32>
    %37 = vector.broadcast %36 : vector<8x1xf32> to vector<8x256xf32>
    %38 = arith.select %9, %37, %2 : vector<8x256xi1>, vector<8x256xf32>
    %cst_16 = arith.constant 3.200000e+01 : f32
    %39 = vector.broadcast %cst_16 : f32 to vector<8x256xf32>
    %40 = arith.mulf %38, %39 : vector<8x256xf32>
    %c0_17 = arith.constant 0 : index
    %c0_18 = arith.constant 0 : index
    %41 = vector.load %arg5[%c0_17, %c0_18] : memref<8x256xf32, #tpu.memory_space<vmem>>, vector<8x256xf32>
    tpu.vector_store %arg5[%c0_17, %c0_18], %40 {strides = array<i32>} : memref<8x256xf32, #tpu.memory_space<vmem>>, vector<8x256xf32>,
    return
  }
  func.func @transform_0(%arg0: i32, %arg1: i32) -> (i32, i32) {
    %c0_i32 = arith.constant 0 : i32
    %c0_i32_0 = arith.constant 0 : i32
    return %arg1, %c0_i32 : i32, i32
  }
  func.func @transform_1(%arg0: i32, %arg1: i32) -> (i32, i32) {
    %c0_i32 = arith.constant 0 : i32
    %c0_i32_0 = arith.constant 0 : i32
    return %arg0, %c0_i32 : i32, i32
  }
  func.func @transform_2(%arg0: i32, %arg1: i32) -> (i32, i32) {
    %c0_i32 = arith.constant 0 : i32
    %c0_i32_0 = arith.constant 0 : i32
    return %arg1, %c0_i32 : i32, i32
  }
  func.func @transform_3(%arg0: i32, %arg1: i32) -> (i32, i32) {
    %c0_i32 = arith.constant 0 : i32
    return %arg1, %arg0 : i32, i32
  }
}

</mosaic_0001>

<bundles_post_ra>
// kernel: tpu_custom_call.1
= control target key start
LH: loop header
LB: loop body
LE: loop exit
PB: predicated region body
PF: predicated region fallthrough
CT: control target
= control target key end

     0   :  { %8 = vsyncpa [#allocation3], 0  ;;  %s1030_s0 = inlined_call_operand.vmem [shape: f32[8,128], index: 0, kind: input, shape index: {}]   ;;  %s1031_s1 = inlined_call_operand.hbm [shape: f32[2048,128], index: 1, kind: input, shape index: {}]   ;;  %s1032_s2 = inlined_call_operand.vmem [shape: s32[8,1], index: 2, kind: input, shape index: {}]   ;;  %s1033_s3 = inlined_call_operand.hbm [shape: f32[8,2048], index: 3, kind: output, shape index: {}]  }
   0x1   :  { %10 = vsyncpa [#allocation3 + $0x1], 0 }
   0x2   :  { %11 = vsyncpa [#allocation4], 0 }
   0x3   :  { %13 = vsyncpa [#allocation4 + $0x1], 0  ;;  %s810_s12 = smov 0   ;;  %s812_s13 = smov 0  }
   0x4   :  { %s814_s14 = smov 0   ;;  %s816_s15 = smov 0  }
   0x5   :  { %s818_s16 = smov 0   ;;  %s820_s17 = smov 0  }
   0x6 LB: > { %s514_s18 = sadd.s32 4294967295, %s783_s17   ;;  %s515_s19 = sadd.s32 4294967294, %s783_s17   ;;  %s783_s17 = sphi %s820_s17, %s19_s17   ;;  %s779_s16 = sphi %s818_s16, %s1047_s16   ;;  %s775_s15 = sphi %s816_s15, %s1046_s15   ;;  %s771_s14 = sphi %s814_s14, %s1045_s14   ;;  %s767_s13 = sphi %s812_s13, %s1044_s13   ;;  %s763_s12 = sphi %s810_s12, %s1043_s12  }
   0x7   : > { %s31_s20 = sadd.s32 1, %s779_s16  ;;  %s64_s21 = sadd.s32 1, %s771_s14 }
   0x8   : > { %p33_p0 = scmp.ge.s32.totalorder %s31_s20, 8  ;;  %p71_p1 = scmp.ne.s32.totalorder %s771_s14, %s767_s13 }
   0x9   : > { %p72_p2 = scmp.eq.s32.totalorder %s783_s17, 0  ;;  %p77_p3 = scmp.ne.s32.totalorder %s767_s13, %s763_s12 }
   0xa   : > { %s1049_s20 = smov (%p33_p0, %s31_s20), 0  ;;  %p78_p5 = scmp.eq.s32.totalorder %s514_s18, 0 }
   0xb   : > { %p851_p4 = por %p72_p2, %p71_p1  ;;  %s61_s23 = ssub.s32 %s779_s16, %s1049_s20 }
   0xc   : > { %p129_p6 = scmp.eq.s32.totalorder %s514_s18, 7  ;;  %p62_p7 = scmp.eq.s32.totalorder %s61_s23, 0 }
   0xd   : > { %p857_p8 = por %p78_p5, %p77_p3  ;;  %p135_p10 = scmp.eq.s32.totalorder %s515_s19, 7 }
   0xe   : > { %p861_p9 = por %p129_p6, %p71_p1  ;;  %p615_p12 = scmp.lt.s32.totalorder %s783_s17, 8 }
   0xf   : > { %s866_s26 = scalar_select %p62_p7, %s771_s14, %s64_s21  }
  0x10   : > { %s1037_s25 = scalar_select %p861_p9, 1, 0 }
  0x11   : > { %p868_p11 = por %p135_p10, %p77_p3  ;;  %s169_s28 = sand.u32 1, %s771_s14  }
  0x12   : > { %s520_s29 = sshll.u32 %s169_s28, 8  ;;  %s535_s30 = sshll.u32 %s779_s16, 12 }
  0x13   : > { %s1038_s27 = scalar_select %p868_p11, 1, 0 }
  0x14   : > { %s878_s6 = scalar_lea.hbm %s1031_s1, %s535_s30  ;;  %s173_s7 = scalar_lea.vmem [#allocation2], %s520_s29 }
  0x15   : > { %s180_s8 = sshll.u32 %s173_s7, 4  ;;  %p884_p13 = pnand %p615_p12, %p851_p4  ;;  %s880_s8 = int_to_ptr.vmem [resolvable:$true] %s180_s8 }
  0x16   : > { %s889_s10 = scalar_lea.sflag [#allocation3], %s169_s28  ;;  %s671_s11 = scalar_lea.hbm %s878_s6, 4096 }
  0x17   : > { %p672_p1 = scmp.ne.s32.totalorder %s878_s6, %s671_s11  ;;  %p673_p2 = pneg %p884_p13 }
  0x18   : > { %s676_s21 = scalar_lea.hbm %s1031_s1, 32768  ;;  %p677_p4 = scmp.lt.u32.totalorder %s878_s6, %s1031_s1 }
  0x19   : > { %p674_p3 = pnand %p673_p2, %p672_p1  ;;  %p678_p6 = scmp.lt.u32.totalorder %s676_s21, %s671_s11 }
  0x1a   : > { %p680_p10 = scmp.lt.u32.totalorder %s671_s11, %s878_s6 }
  0x1b   : > { %p675_p5 = pneg %p674_p3  ;;  %p679_p7 = por %p678_p6, %p677_p4 }
  0x1d   : > { %p681_p12 = por %p680_p10, %p679_p7 }
  0x1f   : > { %p682_p0 = pnand %p681_p12, %p675_p5 }
  0x21   : > { %685 = shalt.err (!%p682_p0)
}
  0x22   : > { %s686_s28 = scalar_lea.vmem %s880_s8, 4096  ;;  %s785_s29 = smov [#allocation2]  }
  0x23   : > { %p687_p1 = scmp.ne.s32.totalorder %s880_s8, %s686_s28  ;;  %s691_s30 = sshll.u32 %s785_s29, 4  ;;  %s692_s30 = int_to_ptr.vmem [resolvable:$false] %s691_s30 }
  0x24   : > { %s693_s4 = scalar_lea.vmem %s692_s30, 8192  ;;  %p694_p9 = scmp.lt.s32.totalorder %s880_s8, %s692_s30 }
  0x25   : > { %p689_p3 = pnand %p687_p1, %p673_p2  ;;  %p695_p4 = scmp.lt.s32.totalorder %s693_s4, %s686_s28 }
  0x27   : > { %p690_p11 = pneg %p689_p3  ;;  %p696_p6 = por %p695_p4, %p694_p9 }
  0x29   : > { %p697_p7 = pnand %p696_p6, %p690_p11 }
  0x2b   : > { %700 = shalt.err (!%p697_p7)
}
  0x2c   : > { %s786_s5 = smov 128   ;;  %s787_s7 = smov 8  }
  0x2d   : > { %610 = dma.hbm_to_vmem [thread:$0]  (!%p884_p13), %s878_s6, 4096, %s880_s8, %s889_s10, %s786_s5, %s786_s5, %s787_s7  }
  0x2e   : > { %p188_p0 = scmp.lt.s32.totalorder %s783_s17, 9  ;;  %p1040_p2 = scmp.ge.s32.totalorder %s783_s17, 1 }
  0x30   : > { %p189_p5 = pnand %p1040_p2, %p188_p0 }
  0x31   : > { %s921_s11 = sand.u32 (!%p189_p5), 1, %s767_s13  }
  0x32   : > { %192 = sbr.rel (%p189_p5) target bundleno = 530 (0x212), region = 32  ;;  %s524_s18 = sshll.u32 (!%p189_p5), %s921_s11, 8 }
  0x33   : > { %s195_s19 = scalar_lea.sflag (!%p189_p5), [#allocation3], %s921_s11  ;;  %s925_s21 = scalar_lea.vmem (!%p189_p5), [#allocation2], %s524_s18 }
  0x39   : > { %754 = dma.done.wait (%p857_p8), %s195_s19, 4096  }
  0x3a   : > { %756 = vsyncadd (%p857_p8), %s195_s19, 4294963200  ;;  %v788_v0 = vmov 0   ;;  %v256_v1 = vld [vmem:[%s925_s21 + $0x80] sm:$0xff]  ;;  %v257_v2 = vld [vmem:[%s925_s21 + $0x88] sm:$0xff]  ;;  %v344_v51 = vlaneseq  ;;  %s526_s10 = sshll.u32 %s775_s15, 8  ;;  %s525_s22 = sshll.u32 %s921_s11, 4 }
  0x3b   : > { %668 = vset.pattern.permute.xlu0 %v788_v0  ;;  %v240_v3 = vld [vmem:[%s925_s21] sm:$0xff]  ;;  %v571_v4 = vpack.c.bf16 %v257_v2, %v256_v1  ;;  %v241_v5 = vld [vmem:[%s925_s21 + $0x8] sm:$0xff]  ;;  %v258_v6 = vld [vmem:[%s925_s21 + $0x90] sm:$0xff]  ;;  %v347_v53 = vstv %s526_s10  ;;  %s228_s23 = scalar_lea.vmem [#allocation5], %s525_s22  ;;  %s980_s4 = scalar_lea.hbm %s1033_s3, %s526_s10 }
  0x3c   : > { %v259_v7 = vld [vmem:[%s925_s21 + $0x98] sm:$0xff]  ;;  %v573_v8 = vpack.c.bf16 %v241_v5, %v240_v3  ;;  %v242_v10 = vld [vmem:[%s925_s21 + $0x10] sm:$0xff]  ;;  %v260_v12 = vld [vmem:[%s925_s21 + $0xa0] sm:$0xff]  ;;  %v345_v52 = vand.u32 127, %v344_v51  ;;  %s403_s28 = sshll.u32 %s228_s23, 4  ;;  %s387_s5 = scalar_lea.sflag [#allocation4], %s921_s11  ;;  %s984_s28 = int_to_ptr.vmem [resolvable:$true] %s403_s28 }
  0x3d   : > { %v575_v9 = vpack.c.bf16 %v259_v7, %v258_v6  ;;  %572 = vmatprep.subr.bf16.mxu0 %v571_v4  ;;  %v243_v11 = vld [vmem:[%s925_s21 + $0x18] sm:$0xff]  ;;  %v261_v13 = vld [vmem:[%s925_s21 + $0xa8] sm:$0xff]  ;;  %v239_v16 = vld [vmem:[%s1030_s0] sm:$0xff]  ;;  %s701_s15 = scalar_lea.vmem %s984_s28, 256  ;;  %p1041_p9 = scmp.ne.s32.totalorder %s1037_s25, 0 }
  0x3e   : > { %574 = vmatpush3.bf16.xpose.msra.mxu0 %v573_v8  ;;  %v577_v14 = vpack.c.bf16 %v243_v11, %v242_v10  ;;  %v579_v15 = vpack.c.bf16 %v261_v13, %v260_v12  ;;  %569 = vmatprep.mubr.f32.mxu0 %v239_v16  ;;  %v350_v17 = vld [vmem:[%s1032_s2] sm:$0xff]  ;;  %v245_v19 = vld [vmem:[%s925_s21 + $0x28] sm:$0xff]  ;;  %v262_v20 = vld [vmem:[%s925_s21 + $0xb0] sm:$0xff]  ;;  %v346_v54 = vadd.s32 128, %v345_v52  ;;  %v348_v55 = vadd.s32 %v347_v53, %v345_v52  ;;  %p702_p8 = scmp.ne.s32.totalorder %s984_s28, %s701_s15  ;;  %s789_s7 = smov [#allocation5]  }
  0x3f   : > { %576 = vmatprep.subr.bf16.mxu0 %v575_v9  ;;  %352 = vperm.xlu0 %668, %v350_v17   ;;  %v244_v18 = vld [vmem:[%s925_s21 + $0x20] sm:$0xff]  ;;  %v263_v21 = vld [vmem:[%s925_s21 + $0xb8] sm:$0xff]  ;;  %v246_v24 = vld [vmem:[%s925_s21 + $0x30] sm:$0xff]  ;;  %s705_s18 = sshll.u32 %s789_s7, 4  ;;  %s706_s18 = int_to_ptr.vmem [resolvable:$false] %s705_s18 }
  0x40   : > { %v581_v22 = vpack.c.bf16 %v245_v19, %v244_v18  ;;  %v583_v23 = vpack.c.bf16 %v263_v21, %v262_v20  ;;  %v247_v25 = vld [vmem:[%s925_s21 + $0x38] sm:$0xff]  ;;  %v264_v26 = vld [vmem:[%s925_s21 + $0xc0] sm:$0xff]  ;;  %v265_v27 = vld [vmem:[%s925_s21 + $0xc8] sm:$0xff]  ;;  %v349_v57 = vadd.s32 %v347_v53, %v346_v54  ;;  %p703_p11 = pnand %p702_p8, %p1041_p9  ;;  %s707_s19 = scalar_lea.vmem %s706_s18, 512 }
  0x41   : > { %v585_v28 = vpack.c.bf16 %v247_v25, %v246_v24  ;;  %v587_v29 = vpack.c.bf16 %v265_v27, %v264_v26  ;;  %v248_v30 = vld [vmem:[%s925_s21 + $0x40] sm:$0xff]  ;;  %v249_v31 = vld [vmem:[%s925_s21 + $0x48] sm:$0xff]  ;;  %v266_v32 = vld [vmem:[%s925_s21 + $0xd0] sm:$0xff]  ;;  %p708_p10 = scmp.lt.s32.totalorder %s984_s28, %s706_s18  ;;  %p709_p12 = scmp.lt.s32.totalorder %s707_s19, %s701_s15 }
  0x42   : > { %v267_v33 = vld [vmem:[%s925_s21 + $0xd8] sm:$0xff]  ;;  %v589_v34 = vpack.c.bf16 %v249_v31, %v248_v30  ;;  %v250_v36 = vld [vmem:[%s925_s21 + $0x50] sm:$0xff]  ;;  %v268_v38 = vld [vmem:[%s925_s21 + $0xe0] sm:$0xff]  ;;  %p704_p13 = pneg %p703_p11 }
  0x43   : > { %v591_v35 = vpack.c.bf16 %v267_v33, %v266_v32  ;;  %v251_v37 = vld [vmem:[%s925_s21 + $0x58] sm:$0xff]  ;;  %v269_v39 = vld [vmem:[%s925_s21 + $0xe8] sm:$0xff]  ;;  %v252_v42 = vld [vmem:[%s925_s21 + $0x60] sm:$0xff]  ;;  %p710_p1 = por %p709_p12, %p708_p10 }
  0x44   : > { %v593_v40 = vpack.c.bf16 %v251_v37, %v250_v36  ;;  %v595_v41 = vpack.c.bf16 %v269_v39, %v268_v38  ;;  %v253_v43 = vld [vmem:[%s925_s21 + $0x68] sm:$0xff]  ;;  %v270_v44 = vld [vmem:[%s925_s21 + $0xf0] sm:$0xff]  ;;  %v271_v45 = vld [vmem:[%s925_s21 + $0xf8] sm:$0xff] }
  0x45   : > { %v597_v46 = vpack.c.bf16 %v253_v43, %v252_v42  ;;  %v599_v47 = vpack.c.bf16 %v271_v45, %v270_v44  ;;  %v254_v48 = vld [vmem:[%s925_s21 + $0x70] sm:$0xff]  ;;  %v255_v49 = vld [vmem:[%s925_s21 + $0x78] sm:$0xff]  ;;  %p711_p3 = pnand %p710_p1, %p704_p13 }
  0x46   : > { %578 = vmatpush3.bf16.xpose.msra.mxu0 %v577_v14  ;;  %v601_v50 = vpack.c.bf16 %v255_v49, %v254_v48 }
  0x47   : > { %580 = vmatprep.subr.bf16.mxu0 %v579_v15 }
  0x4e   : > { %582 = vmatpush3.bf16.xpose.msra.mxu0 %v581_v22 }
  0x4f   : > { %584 = vmatprep.subr.bf16.mxu0 %v583_v23 }
  0x56   : > { %586 = vmatpush3.bf16.xpose.msra.mxu0 %v585_v28 }
  0x57   : > { %588 = vmatprep.subr.bf16.mxu0 %v587_v29 }
  0x5e   : > { %590 = vmatpush3.bf16.xpose.msra.mxu0 %v589_v34 }
  0x5f   : > { %592 = vmatprep.subr.bf16.mxu0 %v591_v35 }
  0x66   : > { %594 = vmatpush3.bf16.xpose.msra.mxu0 %v593_v40 }
  0x67   : > { %596 = vmatprep.subr.bf16.mxu0 %v595_v41 }
  0x6e   : > { %598 = vmatpush3.bf16.xpose.msra.mxu0 %v597_v46 }
  0x6f   : > { %600 = vmatprep.subr.bf16.mxu0 %v599_v47 }
  0x76   : > { %602 = vmatpush3.bf16.xpose.msra.mxu0 %v601_v50 }
  0x7d   : > { %570 = vmatmul.mubr.f32.vlgmr.msra.gmra.mrb[0].mxu0 %v239_v16 }
  0xbe   : > { %v353_v56 = vpop.permute.xlu0 %352 }
  0xbf   : > { %vm354_vm0 = vcmp.eq.s32.totalorder %v348_v55, %v353_v56  ;;  %vm355_vm1 = vcmp.eq.s32.totalorder %v349_v57, %v353_v56 }
 0x150   : > { %v338_v58 = vpop.f32.mrb[0].mxu0 }
 0x151   : > { %v356_v59 = vsel %vm354_vm0, %v338_v58, 0.0  ;;  %v340_v60 = vpop.f32.mrb[1].mxu0 }
 0x152   : > { %v357_v61 = vsel %vm355_vm1, %v340_v60, 0.0 }
 0x153   : > { %v358_v62 = vadd.f32 %v357_v61, %v356_v59 }
 0x155   : > { %359 = vadd.xlane.f32.xlu0 %v358_v62 }
 0x1e2   : > { %v360_v63 = vpop.xlane.xlu0 %359 }
 0x1e3   : > { %v361_v0 = vmul.f32 %v360_v63, %v360_v63  ;;  %v527_v9 = vadd.f32 0.9800666, %v360_v63  ;;  %v372_v10 = vmul.f32 0.9800666, %v360_v63  ;;  %v528_v13 = vadd.f32 -0.039733864, %v360_v63 }
 0x1e5   : > { %v362_v1 = vsub.f32 1.0, %v361_v0  ;;  %vm376_vm4 = vcmp.gt.f32.partialorder %v527_v9, 0.0 }
 0x1e7   : > { %v363_v2 = vmax.f32 %v362_v1, 0.0 }
 0x1e9   : > { %v364_v3 = vmin.f32 %v363_v2, 1.0 }
 0x1eb   : > { %669 = vrsqrt.f32 %v364_v3  ;;  %vm367_vm2 = vcmp.eq.f32.partialorder %v364_v3, inf  ;;  %v370_v6 = vand.u32 2147483648, %v364_v3  ;;  %vm369_vm3 = vcmp.eq.f32.partialorder %v364_v3, 0.0 }
 0x1f5   : > { %v670_v4 = vpop.eup %669 }
 0x1f6   : > { %v366_v5 = vmul.f32 %v670_v4, %v364_v3 }
 0x1f8   : > { %v368_v7 = vsel %vm367_vm2, %v364_v3, %v366_v5 }
 0x1f9   : > { %v371_v8 = vsel %vm369_vm3, %v370_v6, %v368_v7 }
 0x1fa   : > { %v373_v11 = vmul.f32 0.19866933, %v371_v8 }
 0x1fc   : > { %v374_v12 = vsub.f32 %v372_v10, %v373_v11 }
 0x1fe   : > { %v378_v14 = vsel %vm376_vm4, %v374_v12, %v528_v13 }
 0x1ff   : > { %v529_v15 = vadd.f32 -0.35, %v378_v14 }
 0x201   : > { %v380_v16 = vsel %vm354_vm0, %v529_v15, %v338_v58  ;;  %v381_v17 = vsel %vm355_vm1, %v529_v15, %v340_v60 }
 0x202   : > { %v382_v18 = vmul.f32 32.0, %v380_v16  ;;  %v383_v19 = vmul.f32 32.0, %v381_v17 }
 0x204   : > { %384 = vst [vmem:[%s228_s23] sm:$0xff] %v382_v18  ;;  %385 = vst [vmem:[%s228_s23 + $0x8] sm:$0xff] %v383_v19 }
 0x205   : > { %714 = shalt.err (!%p711_p3)
}
 0x206   : > { %s715_s11 = scalar_lea.hbm %s980_s4, 256  ;;  %s719_s6 = scalar_lea.hbm %s1033_s3, 2048 }
 0x207   : > { %p716_p4 = scmp.ne.s32.totalorder %s980_s4, %s715_s11  ;;  %p720_p0 = scmp.lt.u32.totalorder %s980_s4, %s1033_s3 }
 0x208   : > { %p721_p2 = scmp.lt.u32.totalorder %s719_s6, %s715_s11  ;;  %p723_p8 = scmp.lt.u32.totalorder %s715_s11, %s980_s4 }
 0x209   : > { %p717_p6 = pnand %p716_p4, %p1041_p9 }
 0x20a   : > { %p722_p5 = por %p721_p2, %p720_p0 }
 0x20b   : > { %p718_p7 = pneg %p717_p6 }
 0x20c   : > { %p724_p11 = por %p723_p8, %p722_p5 }
 0x20e   : > { %p725_p13 = pnand %p724_p11, %p718_p7 }
 0x210   : > { %728 = shalt.err (!%p725_p13)
}
 0x211   : > { %605 = dma.vmem_to_hbm [thread:$0]  (%p1041_p9), %s984_s28, 256, %s980_s4, %s387_s5  }
 0x212 PF: > { %p616_p10 = scmp.ge.s32.totalorder %s783_s17, 2  ;;  %s415_s10 = sand.u32 1, %s763_s12  }
 0x213   : > { %p1042_p12 = scmp.ne.s32.totalorder %s1038_s27, 0  ;;  %s416_s22 = scalar_lea.sflag [#allocation4], %s415_s10 }
 0x215   : > { %p612_p1 = pnand %p616_p10, %p1042_p12 }
 0x217   : > { %758 = dma.done.wait (!%p612_p1), %s416_s22, 256  }
 0x218   : > { %760 = vsyncadd (!%p612_p1), %s416_s22, 4294967040  ;;  %s19_s17 = sadd.s32 1, %s783_s17   ;;  %s1043_s12 = smov %s767_s13 }
 0x219   : > { %p16_p3 = scmp.ge.s32.totalorder %s19_s17, 10   ;;  %s1044_s13 = smov %s771_s14 }
 0x21a   : > { %s1045_s14 = smov %s866_s26  ;;  %s1046_s15 = smov %s779_s16 }
 0x21b   : > { %s1047_s16 = smov %s1049_s20  ;;  %18 = sbr.rel (!%p16_p3) target bundleno = 6 (0x6), region = 83 }
 0x222   :  { %421 = vsyncpa [#allocation3], 1 }
 0x223   :  { %423 = vsyncpa [#allocation3 + $0x1], 1 }
 0x224   :  { %424 = vsyncpa [#allocation4], 1 }
 0x225   :  { %426 = vsyncpa [#allocation4 + $0x1], 1 }

</bundles_post_ra>
